<compile_context>
chip_gen: v7x
topology: tpu7x:2x2x1
jax: 0.10.0
libtpu: 0.0.40
codegen_flags: <defaults>
</compile_context>

<pallas_src>
import math

import jax
import jax.numpy as jnp
from jax.experimental import pallas as pl
from jax.experimental.pallas import tpu as pltpu

LANES = 128
SUBLANES = 16                    # row alignment safe for f32/bf16/f16 tiling
CHUNK_ROWS = 1024                # in-kernel compute chunk (~0.5 MiB f32 temps)
MAX_BLOCK_ROWS = 8192            # 4 MiB f32 per input tile on the reduce path
NONE_BLOCK_ROWS = 2048           # 'none' path also streams an output
ACC_ROWS = 64                    # resident accumulator height
VMEM_LIMIT = 40 * 1024 * 1024    # > v5e 16 MiB scoped default, < v7x 64 MiB physical

NEUTRAL_LOGIT = -1.0e4           # focal(NEUTRAL_LOGIT, 0) == 0 exactly in f32


def _round_up(x, m):
    return -(-x // m) * m


def _apply_gamma(base, gamma):
    """(base)**gamma, specialized at trace time for small integer gamma."""
    g = float(gamma)
    if g == 0.0:
        return jnp.ones_like(base)
    if g.is_integer() and 1.0 <= g <= 8.0:
        out = base
        for _ in range(int(g) - 1):
            out = out * base
        return out
    # Non-integer gamma: clamp tiny negative bases (rounding) to avoid NaN.
    return jnp.maximum(base, 0.0) ** g


def _focal_elementwise(x, t, alpha, gamma, assume_binary):
    """Stable binary focal loss with logits, elementwise, f32."""
    x = x.astype(jnp.float32)
    t = t.astype(jnp.float32)
    e = jnp.exp(-jnp.abs(x))
    # binary_cross_entropy_with_logits, reduction='none' (stable form):
    ce = jnp.maximum(x, 0.0) - x * t + jnp.log1p(e)
    if assume_binary:
        # Targets in {0,1}: pt = sigmoid(x) (t==1) or 1-sigmoid(x) (t==0),
        # reusing e so only 2 transcendentals/element are needed.
        num = jnp.where(t > 0.5,
                        jnp.where(x >= 0.0, 1.0, e),
                        jnp.where(x >= 0.0, e, 1.0))
        pt = num / (1.0 + e)
    else:
        pt = jnp.exp(-ce)
    focal = _apply_gamma(1.0 - pt, gamma) * ce
    a = float(alpha)
    if a != 1.0:
        focal = a * focal
    return focal


def _flatten_pad(inputs, targets, m_rows):
    """Flatten to (m_rows, LANES); pad (if needed) with loss-neutral values."""
    n = int(inputs.size)
    total = m_rows * LANES
    flat_x = inputs.reshape(-1)
    flat_t = targets.reshape(-1)
    if total != n:
        pad = total - n
        flat_x = jnp.pad(flat_x, (0, pad), constant_values=NEUTRAL_LOGIT)
        flat_t = jnp.pad(flat_t, (0, pad), constant_values=0)
    return flat_x.reshape(m_rows, LANES), flat_t.reshape(m_rows, LANES)


def _make_reduce_kernel(alpha, gamma, crows, n_chunks, acc_rows, assume_binary):
    def accumulate(x_blk, t_blk, o_ref):
        focal = _focal_elementwise(x_blk, t_blk, alpha, gamma, assume_binary)
        # Vector-shaped accumulation into the resident (acc_rows,128) block:
        # acc_rows independent VPU add chains; final reduce happens outside.
        o_ref[...] += jnp.sum(
            focal.reshape(crows // acc_rows, acc_rows, LANES), axis=0)

    def kernel(x_ref, t_ref, o_ref):
        @pl.when(pl.program_id(1) == 0)
        def _():
            o_ref[...] = jnp.zeros_like(o_ref)

        if n_chunks == 1:
            accumulate(x_ref[...], t_ref[...], o_ref)
        else:
            @pl.loop(0, n_chunks)
            def _(c):
                r0 = pl.multiple_of(c * crows, crows)
                accumulate(x_ref[pl.ds(r0, crows), :],
                           t_ref[pl.ds(r0, crows), :],
                           o_ref)

    return kernel


def _make_elementwise_kernel(alpha, gamma, out_dtype, assume_binary):
    def kernel(x_ref, t_ref, o_ref):
        focal = _focal_elementwise(x_ref[...], t_ref[...], alpha, gamma,
                                   assume_binary)
        o_ref[...] = focal.astype(out_dtype)

    return kernel


def focal_loss(inputs, targets, alpha=1.0, gamma=2.0, reduction="mean",
               assume_binary_targets=False):
    """Pallas TPU implementation of FocalLoss.forward."""
    assert inputs.shape == targets.shape
    if reduction not in ("mean", "sum", "none"):
        raise ValueError(f"unknown reduction: {reduction!r}")

    n = int(inputs.size)
    in_dtype = inputs.dtype
    m_needed = pl.cdiv(n, LANES)

    if reduction == "none":
        if m_needed <= NONE_BLOCK_ROWS:
            block_rows = max(SUBLANES, _round_up(m_needed, SUBLANES))
            tiles = 1
        else:
            block_rows = NONE_BLOCK_ROWS
            tiles = pl.cdiv(m_needed, block_rows)
        m = tiles * block_rows
        x2d, t2d = _flatten_pad(inputs, targets, m)
        kernel = _make_elementwise_kernel(float(alpha), float(gamma), in_dtype,
                                          assume_binary_targets)
        out2d = pl.pallas_call(
            kernel,
            out_shape=jax.ShapeDtypeStruct((m, LANES), in_dtype),
            grid_spec=pltpu.PrefetchScalarGridSpec(
                num_scalar_prefetch=0,
                grid=(tiles,),
                in_specs=[
                    pl.BlockSpec((block_rows, LANES), lambda i: (i, 0)),
                    pl.BlockSpec((block_rows, LANES), lambda i: (i, 0)),
                ],
                out_specs=pl.BlockSpec((block_rows, LANES), lambda i: (i, 0)),
            ),
            compiler_params=pltpu.CompilerParams(
                dimension_semantics=("parallel",),
                vmem_limit_bytes=VMEM_LIMIT),
        )(x2d, t2d)
        if m * LANES == n:
            return out2d.reshape(inputs.shape)
        return out2d.reshape(-1)[:n].reshape(inputs.shape)

    # mean / sum: streaming partial-sum reduction.
    if m_needed <= CHUNK_ROWS:
        block_rows = max(SUBLANES, _round_up(m_needed, SUBLANES))
        crows = block_rows
        tiles = 1
        p_split = 1
        tiles_per_part = 1
    else:
        crows = CHUNK_ROWS
        block_rows = min(MAX_BLOCK_ROWS, _round_up(m_needed, CHUNK_ROWS))
        tiles_needed = pl.cdiv(m_needed, block_rows)
        # Unconditional 2-way split whenever there is more than one tile so
        # both v7x TensorCores run; tiles are padded to a multiple of p_split
        # with loss-neutral data.
        p_split = 2 if tiles_needed >= 2 else 1
        tiles_per_part = pl.cdiv(tiles_needed, p_split)
        tiles = tiles_per_part * p_split
    m = tiles * block_rows
    n_chunks = block_rows // crows
    acc_rows = math.gcd(crows, ACC_ROWS)

    x2d, t2d = _flatten_pad(inputs, targets, m)
    kernel = _make_reduce_kernel(float(alpha), float(gamma), crows, n_chunks,
                                 acc_rows, assume_binary_targets)

    tpp = tiles_per_part
    in_map = lambda p, t: (p * tpp + t, 0)

    partials = pl.pallas_call(
        kernel,
        out_shape=jax.ShapeDtypeStruct((p_split * acc_rows, LANES), jnp.float32),
        grid_spec=pltpu.PrefetchScalarGridSpec(
            num_scalar_prefetch=0,
            grid=(p_split, tiles_per_part),
            in_specs=[
                pl.BlockSpec((block_rows, LANES), in_map),
                pl.BlockSpec((block_rows, LANES), in_map),
            ],
            out_specs=pl.BlockSpec((acc_rows, LANES), lambda p, t: (p, 0)),
        ),
        compiler_params=pltpu.CompilerParams(
            dimension_semantics=("parallel", "arbitrary"),
            vmem_limit_bytes=VMEM_LIMIT),
    )(x2d, t2d)

    total = jnp.sum(partials)
    if reduction == "mean":
        total = total / jnp.float32(n)
    return total.astype(in_dtype)


def focal_loss_ref(inputs, targets, alpha=1.0, gamma=2.0, reduction="mean"):
    x = inputs.astype(jnp.float32)
    t = targets.astype(jnp.float32)
    ce = jnp.maximum(x, 0.0) - x * t + jnp.log1p(jnp.exp(-jnp.abs(x)))
    pt = jnp.exp(-ce)
    fl = alpha * (1.0 - pt) ** gamma * ce
    if reduction == "mean":
        return fl.mean()
    elif reduction == "sum":
        return fl.sum()
    return fl


if __name__ == "__main__":
    key = jax.random.PRNGKey(0)
    k1, k2, k3, k4 = jax.random.split(key, 4)

    # NCHW logits and binary targets, small shapes.
    B, C, H, W = 2, 4, 16, 16
    logits = jax.random.normal(k1, (B, C, H, W), dtype=jnp.float32) * 2.0
    targets = jax.random.bernoulli(k2, 0.5, (B, C, H, W)).astype(jnp.float32)

    ref_mean = focal_loss_ref(logits, targets, 1.0, 2.0, "mean")
    out_mean = jax.block_until_ready(
        focal_loss(logits, targets, alpha=1.0, gamma=2.0, reduction="mean"))
    assert jnp.allclose(out_mean, ref_mean, rtol=1e-5, atol=1e-6), (out_mean, ref_mean)

    out_sum = jax.block_until_ready(
        focal_loss(logits, targets, alpha=1.0, gamma=2.0, reduction="sum"))
    ref_sum = focal_loss_ref(logits, targets, 1.0, 2.0, "sum")
    assert jnp.allclose(out_sum, ref_sum, rtol=1e-5, atol=1e-4), (out_sum, ref_sum)

    out_none = jax.block_until_ready(
        focal_loss(logits, targets, alpha=1.0, gamma=2.0, reduction="none"))
    ref_none = focal_loss_ref(logits, targets, 1.0, 2.0, "none")
    assert out_none.shape == logits.shape and out_none.dtype == logits.dtype
    assert jnp.allclose(out_none, ref_none, rtol=1e-5, atol=1e-6)

    # Binary-target fast path (2 transcendentals/element) matches the generic one.
    out_bin = jax.block_until_ready(
        focal_loss(logits, targets, reduction="mean", assume_binary_targets=True))
    assert jnp.allclose(out_bin, ref_mean, rtol=1e-5, atol=1e-6), (out_bin, ref_mean)

    # Ragged element count -> exercises the loss-neutral padding path.
    rx = jax.random.normal(k3, (3, 5, 7), dtype=jnp.float32)
    rt = jax.random.bernoulli(k4, 0.5, (3, 5, 7)).astype(jnp.float32)
    out_r = jax.block_until_ready(focal_loss(rx, rt, reduction="sum"))
    ref_r = focal_loss_ref(rx, rt, 1.0, 2.0, "sum")
    assert jnp.allclose(out_r, ref_r, rtol=1e-5, atol=1e-4), (out_r, ref_r)
    out_rn = jax.block_until_ready(focal_loss(rx, rt, reduction="none"))
    ref_rn = focal_loss_ref(rx, rt, 1.0, 2.0, "none")
    assert jnp.allclose(out_rn, ref_rn, rtol=1e-5, atol=1e-6)

    print("KERNEL_OK")
</pallas_src>

<mosaic_0001>
module attributes {stable_mosaic.version = 11 : i64} {
  func.func @kernel(%arg0: i32, %arg1: i32, %arg2: memref<16x128xf32, #tpu.memory_space<vmem>>, %arg3: memref<16x128xf32, #tpu.memory_space<vmem>>, %arg4: memref<16x128xf32, #tpu.memory_space<vmem>>) attributes {dimension_semantics = [#tpu.dimension_semantics<parallel>, #tpu.dimension_semantics<arbitrary>], iteration_bounds = array<i64: 1, 1>, scalar_prefetch = 0 : i64, scratch_operands = 0 : i64, tpu.core_type = #tpu.core_type<tc>, window_params = [{transform_indices = @transform_0, window_bounds = array<i64: 16, 128>}, {transform_indices = @transform_1, window_bounds = array<i64: 16, 128>}, {transform_indices = @transform_2, window_bounds = array<i64: 16, 128>}]} {
    %c0_i32 = arith.constant 0 : i32
    %0 = arith.cmpi eq, %arg1, %c0_i32 : i32
    %1 = arith.extui %0 : i1 to i32
    %c0_i32_0 = arith.constant 0 : i32
    %2 = arith.cmpi ne, %1, %c0_i32_0 : i32
    scf.if %2 {
      %cst_12 = arith.constant 0.000000e+00 : f32
      %27 = vector.broadcast %cst_12 : f32 to vector<16x128xf32>
      %c0_13 = arith.constant 0 : index
      %c0_14 = arith.constant 0 : index
      %28 = vector.load %arg4[%c0_13, %c0_14] : memref<16x128xf32, #tpu.memory_space<vmem>>, vector<16x128xf32>
      tpu.vector_store %arg4[%c0_13, %c0_14], %27 {strides = array<i32>} : memref<16x128xf32, #tpu.memory_space<vmem>>, vector<16x128xf32>,
    } else {
    }
    %c0 = arith.constant 0 : index
    %c0_1 = arith.constant 0 : index
    %3 = vector.load %arg2[%c0, %c0_1] : memref<16x128xf32, #tpu.memory_space<vmem>>, vector<16x128xf32>
    %c0_2 = arith.constant 0 : index
    %c0_3 = arith.constant 0 : index
    %4 = vector.load %arg3[%c0_2, %c0_3] : memref<16x128xf32, #tpu.memory_space<vmem>>, vector<16x128xf32>
    %5 = math.absf %3 : vector<16x128xf32>
    %cst = arith.constant 0.000000e+00 : f32
    %6 = vector.broadcast %cst : f32 to vector<16x128xf32>
    %7 = arith.subf %6, %5 : vector<16x128xf32>
    %8 = math.exp %7 : vector<16x128xf32>
    %cst_4 = arith.constant 0.000000e+00 : f32
    %9 = vector.broadcast %cst_4 : f32 to vector<16x128xf32>
    %10 = arith.maximumf %3, %9 : vector<16x128xf32>
    %11 = arith.mulf %3, %4 : vector<16x128xf32>
    %12 = arith.subf %10, %11 : vector<16x128xf32>
    %13 = math.log1p %8 : vector<16x128xf32>
    %14 = arith.addf %12, %13 : vector<16x128xf32>
    %cst_5 = arith.constant 0.000000e+00 : f32
    %15 = vector.broadcast %cst_5 : f32 to vector<16x128xf32>
    %16 = arith.subf %15, %14 : vector<16x128xf32>
    %17 = math.exp %16 : vector<16x128xf32>
    %cst_6 = arith.constant 1.000000e+00 : f32
    %18 = vector.broadcast %cst_6 : f32 to vector<16x128xf32>
    %19 = arith.subf %18, %17 : vector<16x128xf32>
    %20 = arith.mulf %19, %19 : vector<16x128xf32>
    %21 = arith.mulf %20, %14 : vector<16x128xf32>
    %c0_7 = arith.constant 0 : index
    %c0_8 = arith.constant 0 : index
    %22 = vector.load %arg4[%c0_7, %c0_8] : memref<16x128xf32, #tpu.memory_space<vmem>>, vector<16x128xf32>
    %23 = vector.shape_cast %21 : vector<16x128xf32> to vector<1x16x128xf32>
    %cst_9 = arith.constant dense<0.000000e+00> : vector<16x128xf32>
    %24 = vector.multi_reduction <add>, %23, %cst_9 [0] : vector<1x16x128xf32> to vector<16x128xf32>
    %25 = arith.addf %22, %24 : vector<16x128xf32>
    %c0_10 = arith.constant 0 : index
    %c0_11 = arith.constant 0 : index
    %26 = vector.load %arg4[%c0_10, %c0_11] : memref<16x128xf32, #tpu.memory_space<vmem>>, vector<16x128xf32>
    tpu.vector_store %arg4[%c0_10, %c0_11], %25 {strides = array<i32>} : memref<16x128xf32, #tpu.memory_space<vmem>>, vector<16x128xf32>,
    return
  }
  func.func @transform_0(%arg0: i32, %arg1: i32) -> (i32, i32) {
    %c1_i32 = arith.constant 1 : i32
    %0 = arith.muli %arg0, %c1_i32 : i32
    %1 = arith.addi %0, %arg1 : i32
    %c0_i32 = arith.constant 0 : i32
    %c0_i32_0 = arith.constant 0 : i32
    return %1, %c0_i32 : i32, i32
  }
  func.func @transform_1(%arg0: i32, %arg1: i32) -> (i32, i32) {
    %c1_i32 = arith.constant 1 : i32
    %0 = arith.muli %arg0, %c1_i32 : i32
    %1 = arith.addi %0, %arg1 : i32
    %c0_i32 = arith.constant 0 : i32
    %c0_i32_0 = arith.constant 0 : i32
    return %1, %c0_i32 : i32, i32
  }
  func.func @transform_2(%arg0: i32, %arg1: i32) -> (i32, i32) {
    %c0_i32 = arith.constant 0 : i32
    %c0_i32_0 = arith.constant 0 : i32
    return %arg0, %c0_i32 : i32, i32
  }
}

</mosaic_0001>

<bundles_post_ra>
// kernel: tpu_custom_call.1
= control target key start
LH: loop header
LB: loop body
LE: loop exit
PB: predicated region body
PF: predicated region fallthrough
CT: control target
= control target key end

     0   :  { %7 = vsyncpa [#allocation3], 0  ;;  %s289_s0 = inlined_call_operand.hbm [shape: f32[16,128], index: 0, kind: input, shape index: {}]   ;;  %s290_s1 = inlined_call_operand.hbm [shape: f32[16,128], index: 1, kind: input, shape index: {}]   ;;  %s291_s2 = inlined_call_operand.hbm [shape: f32[16,128], index: 2, kind: output, shape index: {}]  }
   0x1   :  { %8 = vsyncpa [#allocation6], 0 }
   0x2   :  { %9 = vsyncpa [#allocation4], 0  ;;  %s224_s9 = smov [#allocation2]   ;;  %s152_s13 = scalar_lea.hbm %s289_s0, 256 }
   0x3   :  { %s19_s10 = sshll.u32 %s224_s9, 4  ;;  %p153_p0 = scmp.ne.s32.totalorder %s289_s0, %s152_s13  ;;  %s20_s10 = int_to_ptr.vmem [resolvable:$true] %s19_s10 }
   0x4   :  { %p156_p1 = scmp.lt.u32.totalorder %s152_s13, %s289_s0 }
   0x6   :  { %p158_p2 = pnand %p156_p1, %p153_p0 }
   0x8   :  { %161 = shalt.err (!%p158_p2)
}
   0x9   :  { %s162_s18 = scalar_lea.vmem %s20_s10, 256  ;;  %p167_p4 = scmp.lt.s32.totalorder %s20_s10, %s20_s10 }
   0xa   :  { %p163_p3 = scmp.ne.s32.totalorder %s20_s10, %s162_s18  ;;  %p168_p5 = scmp.lt.s32.totalorder %s162_s18, %s162_s18 }
   0xc   :  { %p169_p6 = por %p168_p5, %p167_p4 }
   0xe   :  { %p170_p7 = pnand %p169_p6, %p163_p3 }
  0x10   :  { %173 = shalt.err (!%p170_p7)
}
  0x11   :  { %s225_s19 = smov 128   ;;  %s226_s20 = smov 8  }
  0x12   :  { %25 = dma.hbm_to_vmem [thread:$0]  %s289_s0, 256, %s20_s10, [#allocation3], %s225_s19, %s225_s19, %s226_s20  }
  0x13   :  { %s227_s23 = smov [#allocation5]   ;;  %s174_s27 = scalar_lea.hbm %s290_s1, 256 }
  0x14   :  { %s35_s24 = sshll.u32 %s227_s23, 4  ;;  %p175_p8 = scmp.ne.s32.totalorder %s290_s1, %s174_s27  ;;  %s36_s24 = int_to_ptr.vmem [resolvable:$true] %s35_s24 }
  0x15   :  { %p178_p9 = scmp.lt.u32.totalorder %s174_s27, %s290_s1 }
  0x17   :  { %p180_p10 = pnand %p178_p9, %p175_p8 }
  0x19   :  { %183 = shalt.err (!%p180_p10)
}
  0x1a   :  { %s184_s4 = scalar_lea.vmem %s36_s24, 256  ;;  %p189_p12 = scmp.lt.s32.totalorder %s36_s24, %s36_s24 }
  0x1b   :  { %p185_p11 = scmp.ne.s32.totalorder %s36_s24, %s184_s4  ;;  %p190_p13 = scmp.lt.s32.totalorder %s184_s4, %s184_s4 }
  0x1d   :  { %p191_p0 = por %p190_p13, %p189_p12 }
  0x1f   :  { %p192_p1 = pnand %p191_p0, %p185_p11 }
  0x21   :  { %195 = shalt.err (!%p192_p1)
}
  0x22   :  { %41 = dma.hbm_to_vmem [thread:$0]  %s290_s1, 256, %s36_s24, [#allocation6], %s225_s19, %s225_s19, %s226_s20  }
  0x23   :  { %218 = dma.done.wait [#allocation3], 256  }
  0x24   :  { %219 = vsyncadd [#allocation3], 4294967040 }
  0x25   :  { %220 = dma.done.wait [#allocation6], 256  }
  0x26   :  { %221 = vsyncadd [#allocation6], 4294967040  ;;  %v58_v0 = vld [vmem:[#allocation2] sm:$0xff]  ;;  %v59_v1 = vld [vmem:[#allocation2 + $0x8] sm:$0xff]  ;;  %s228_s1 = smov [#allocation7]  }
  0x27   :  { %v62_v2 = vand.u32 2147483647, %v58_v0  ;;  %v63_v3 = vand.u32 2147483647, %v59_v1  ;;  %v60_v14 = vld [vmem:[#allocation5] sm:$0xff]  ;;  %v61_v15 = vld [vmem:[#allocation5 + $0x8] sm:$0xff] }
  0x28   :  { %v70_v17 = vmax.f32 %v58_v0, 0.0  ;;  %v72_v18 = vmul.f32 %v60_v14, %v58_v0  ;;  %v71_v21 = vmax.f32 %v59_v1, 0.0  ;;  %v73_v22 = vmul.f32 %v61_v15, %v59_v1  ;;  %s121_s6 = sshll.u32 %s228_s1, 4  ;;  %s122_s6 = int_to_ptr.vmem [resolvable:$true] %s121_s6 }
  0x29   :  { %v64_v4 = vsub.f32 0.0, %v62_v2  ;;  %v65_v5 = vsub.f32 0.0, %v63_v3  ;;  %s196_s7 = scalar_lea.vmem %s122_s6, 256  ;;  %p201_p3 = scmp.lt.s32.totalorder %s122_s6, %s122_s6 }
  0x2a   :  { %v74_v26 = vsub.f32 %v70_v17, %v72_v18  ;;  %v75_v30 = vsub.f32 %v71_v21, %v73_v22  ;;  %p197_p2 = scmp.ne.s32.totalorder %s122_s6, %s196_s7  ;;  %p202_p4 = scmp.lt.s32.totalorder %s196_s7, %s196_s7 }
  0x2b   :  { %v66_v6 = vmul.f32 1.442695, %v64_v4  ;;  %v68_v7 = vmul.f32 1.442695, %v65_v5 }
  0x2c   :  { %p203_p5 = por %p202_p4, %p201_p3 }
  0x2d   :  { %140 = vpow2.f32 %v66_v6 }
  0x2e   :  { %142 = vpow2.f32 %v68_v7  ;;  %p204_p6 = pnand %p203_p5, %p197_p2 }
  0x37   :  { %v141_v8 = vpop.eup %140 }
  0x38   :  { %v143_v9 = vpop.eup %142  ;;  %v76_v10 = vadd.f32 1.0, %v141_v8  ;;  %v79_v12 = vmul.f32 -0.5, %v141_v8  ;;  %v82_v19 = vand.u32 2147483647, %v141_v8 }
  0x39   :  { %v85_v11 = vadd.f32 1.0, %v143_v9  ;;  %v88_v13 = vmul.f32 -0.5, %v143_v9  ;;  %v91_v23 = vand.u32 2147483647, %v143_v9 }
  0x3a   :  { %144 = vlog2.f32 %v76_v10  ;;  %v80_v16 = vadd.f32 1.0, %v79_v12  ;;  %vm83_vm0 = vcmp.lt.f32.partialorder %v82_v19, 0.0004427343 }
  0x3b   :  { %146 = vlog2.f32 %v85_v11  ;;  %v89_v20 = vadd.f32 1.0, %v88_v13  ;;  %vm92_vm1 = vcmp.lt.f32.partialorder %v91_v23, 0.0004427343 }
  0x3c   :  { %v81_v24 = vmul.f32 %v141_v8, %v80_v16 }
  0x3d   :  { %v90_v27 = vmul.f32 %v143_v9, %v89_v20 }
  0x44   :  { %v145_v25 = vpop.eup %144 }
  0x45   :  { %v147_v28 = vpop.eup %146  ;;  %v78_v29 = vmul.f32 0.6931472, %v145_v25 }
  0x46   :  { %v87_v31 = vmul.f32 0.6931472, %v147_v28 }
  0x47   :  { %v84_v32 = vsel %vm83_vm0, %v81_v24, %v78_v29 }
  0x48   :  { %v94_v33 = vadd.f32 %v84_v32, %v74_v26  ;;  %v93_v34 = vsel %vm92_vm1, %v90_v27, %v87_v31 }
  0x49   :  { %v95_v35 = vadd.f32 %v93_v34, %v75_v30 }
  0x4a   :  { %v96_v36 = vsub.f32 0.0, %v94_v33 }
  0x4b   :  { %v97_v37 = vsub.f32 0.0, %v95_v35 }
  0x4c   :  { %v98_v38 = vmul.f32 1.442695, %v96_v36 }
  0x4d   :  { %v100_v39 = vmul.f32 1.442695, %v97_v37 }
  0x4e   :  { %148 = vpow2.f32 %v98_v38 }
  0x4f   :  { %150 = vpow2.f32 %v100_v39 }
  0x58   :  { %v149_v40 = vpop.eup %148 }
  0x59   :  { %v151_v41 = vpop.eup %150  ;;  %v102_v42 = vsub.f32 1.0, %v149_v40 }
  0x5a   :  { %v103_v43 = vsub.f32 1.0, %v151_v41 }
  0x5b   :  { %v104_v44 = vmul.f32 %v102_v42, %v102_v42 }
  0x5c   :  { %v105_v45 = vmul.f32 %v103_v43, %v103_v43 }
  0x5d   :  { %v106_v46 = vmul.f32 %v104_v44, %v94_v33 }
  0x5e   :  { %v107_v47 = vmul.f32 %v105_v45, %v95_v35 }
  0x5f   :  { %114 = vst [vmem:[#allocation7] sm:$0xff] %v106_v46 }
  0x60   :  { %115 = vst [vmem:[#allocation7 + $0x8] sm:$0xff] %v107_v47 }
  0x61   :  { %207 = shalt.err (!%p204_p6)
}
  0x62   :  { %s208_s10 = scalar_lea.hbm %s291_s2, 256 }
  0x63   :  { %p209_p7 = scmp.ne.s32.totalorder %s291_s2, %s208_s10  ;;  %p212_p8 = scmp.lt.u32.totalorder %s208_s10, %s291_s2 }
  0x65   :  { %p214_p9 = pnand %p212_p8, %p209_p7 }
  0x67   :  { %217 = shalt.err (!%p214_p9)
}
  0x68   :  { %127 = dma.vmem_to_hbm [thread:$0]  %s122_s6, 256, %s291_s2, [#allocation4], %s225_s19, %s225_s19, %s226_s20  }
  0x69   :  { %222 = dma.done.wait [#allocation4], 256  }
  0x6a   :  { %223 = vsyncadd [#allocation4], 4294967040 }
  0x6b   :  { %131 = vsyncpa [#allocation3], 1 }
  0x6c   :  { %132 = vsyncpa [#allocation6], 1 }
  0x6d   :  { %133 = vsyncpa [#allocation4], 1 }

</bundles_post_ra>
